<compile_context>
chip_gen: v7x
topology: tpu7x:2x2x1
jax: 0.10.0
libtpu: 0.0.40
codegen_flags: <defaults>
</compile_context>

<pallas_src>
import jax
import jax.numpy as jnp
from jax.experimental import pallas as pl
from jax.experimental.pallas import tpu as pltpu

_LANE = 128
_TILE_N_MAX = 32768           # max lane-dense N tile (multiple of 128)
_TARGET_BLOCK_POINTS = 65536  # target bb * tile_n per grid step (~5 MiB dbl-buffered)


def _normalize_kernel(pts_ref, kinv_ref, o1_ref, o2_ref):
    # pts_ref : (bb, 4, tn)   channels-first, N on the lane axis (dense)
    # kinv_ref: (bb, 3, 3)    per-step K^-1 block
    # o*_ref  : (bb, 3, tn)
    x1 = pts_ref[:, 0:1, :].astype(jnp.float32)   # (bb, 1, tn)
    y1 = pts_ref[:, 1:2, :].astype(jnp.float32)
    x2 = pts_ref[:, 2:3, :].astype(jnp.float32)
    y2 = pts_ref[:, 3:4, :].astype(jnp.float32)

    K = kinv_ref[...].astype(jnp.float32)          # (bb, 3, 3)
    k0 = K[:, :, 0:1]                              # (bb, 3, 1)
    k1 = K[:, :, 1:2]
    k2 = K[:, :, 2:3]

    # out[b, i, n] = K[b,i,0]*x[n] + K[b,i,1]*y[n] + K[b,i,2]*1   (exact f32, VPU)
    o1_ref[...] = (k0 * x1 + k1 * y1 + k2).astype(o1_ref.dtype)
    o2_ref[...] = (k0 * x2 + k1 * y2 + k2).astype(o2_ref.dtype)


def _pick_blocks(batch, n):
    """Choose (bb, tile_n).

    tile_n: full-extent N if it fits in one lane-dense tile (legal for any N),
            otherwise a 128-multiple tile (last tile ragged -> masked stores).
    bb:     divisor of `batch` targeting ~_TARGET_BLOCK_POINTS points/step.
    No extra grid steps are forced: single-TC chips (v5e/v6e) run the grid as a
    serial loop, and v7x gets N-axis parallelism automatically once N > tile_n.
    """
    n128 = -(-n // _LANE) * _LANE
    if n128 <= _TILE_N_MAX:
        tile_n = n                    # one full-extent N tile per batch block
        eff_n = n128
    else:
        tile_n = _TILE_N_MAX          # lane-dense tiles; last one may be ragged
        eff_n = _TILE_N_MAX
    bb = max(1, min(batch, _TARGET_BLOCK_POINTS // eff_n))
    while batch % bb:                 # snap to a divisor (avoid ragged batch blocks)
        bb -= 1
    return bb, tile_n


@jax.jit
def normalize_and_expand_k(pts, K_invs):
    """Pallas TPU forward of NormalizeAndExpand_K.

    pts: (B, N, 4) float, K_invs: (B, 3, 3) float.
    Returns (pts1, pts2, T1, T2) with pts1/pts2 of shape (B, 3, N),
    T1 = T2 = K_invs (same as the PyTorch module).
    """
    B, N, C = pts.shape
    if C != 4:
        raise ValueError("pts must have 4 coordinate channels (x1, y1, x2, y2)")
    dtype = pts.dtype

    # Channels-first relayout in the wrapper: keeps the kernel's input blocks
    # lane-dense (N on lanes) with only a sublane 4->8 pad in VMEM.
    pts_t = jnp.transpose(pts, (0, 2, 1))          # (B, 4, N)

    bb, tile_n = _pick_blocks(B, N)
    grid = (B // bb, pl.cdiv(N, tile_n))

    itemsize = jnp.dtype(dtype).itemsize
    cost = pl.CostEstimate(
        flops=24 * B * N,
        transcendentals=0,
        bytes_accessed=(pts_t.size * itemsize
                        + K_invs.size * jnp.dtype(K_invs.dtype).itemsize
                        + 2 * B * 3 * N * itemsize),
    )

    out_shape = (
        jax.ShapeDtypeStruct((B, 3, N), dtype),
        jax.ShapeDtypeStruct((B, 3, N), dtype),
    )

    pts1, pts2 = pl.pallas_call(
        _normalize_kernel,
        out_shape=out_shape,
        grid_spec=pltpu.PrefetchScalarGridSpec(
            num_scalar_prefetch=0,
            grid=grid,
            in_specs=[
                # (bb, 4, tile_n) lane-dense point block.
                pl.BlockSpec((bb, 4, tile_n), lambda b, n: (b, 0, n)),
                # Tiny per-step K^-1 block (36*bb bytes of DMA per step).
                pl.BlockSpec((bb, 3, 3), lambda b, n: (b, 0, 0)),
            ],
            out_specs=[
                pl.BlockSpec((bb, 3, tile_n), lambda b, n: (b, 0, n)),
                pl.BlockSpec((bb, 3, tile_n), lambda b, n: (b, 0, n)),
            ],
        ),
        compiler_params=pltpu.CompilerParams(
            dimension_semantics=("parallel", "parallel"),
            vmem_limit_bytes=32 * 1024 * 1024,
        ),
        cost_estimate=cost,
    )(pts_t, K_invs)

    return pts1, pts2, K_invs, K_invs


def _reference(pts, K_invs):
    # Exact f32 elementwise reference (matches torch.bmm(K_inv, [p;1]^T)).
    x1 = pts[:, None, :, 0]
    y1 = pts[:, None, :, 1]
    x2 = pts[:, None, :, 2]
    y2 = pts[:, None, :, 3]
    k0 = K_invs[:, :, 0:1]
    k1 = K_invs[:, :, 1:2]
    k2 = K_invs[:, :, 2:3]
    r1 = k0 * x1 + k1 * y1 + k2
    r2 = k0 * x2 + k1 * y2 + k2
    return r1, r2, K_invs, K_invs


if __name__ == "__main__":
    key = jax.random.PRNGKey(0)
    k_pts, k_kinv = jax.random.split(key)

    # Two small cases: a lane-aligned N and a ragged N (exercises masked stores).
    for (B, N) in [(2, 512), (3, 200)]:
        pts = jax.random.normal(k_pts, (B, N, 4), dtype=jnp.float32) * 100.0
        # Synthetic K^-1: identity-ish with a small random perturbation.
        K_invs = (jnp.eye(3, dtype=jnp.float32)[None].repeat(B, axis=0)
                  + 0.01 * jax.random.normal(k_kinv, (B, 3, 3), dtype=jnp.float32))

        pts1, pts2, T1, T2 = jax.block_until_ready(
            normalize_and_expand_k(pts, K_invs))

        r1, r2, rT1, rT2 = _reference(pts, K_invs)

        assert pts1.shape == (B, 3, N) and pts2.shape == (B, 3, N)
        assert jnp.allclose(pts1, r1, atol=1e-3, rtol=1e-4), \
            float(jnp.max(jnp.abs(pts1 - r1)))
        assert jnp.allclose(pts2, r2, atol=1e-3, rtol=1e-4), \
            float(jnp.max(jnp.abs(pts2 - r2)))
        assert jnp.allclose(T1, rT1) and jnp.allclose(T2, rT2)

    print("KERNEL_OK")
</pallas_src>

<mosaic_0001>
module attributes {stable_mosaic.version = 11 : i64} {
  func.func @_normalize_kernel(%arg0: i32, %arg1: i32, %arg2: memref<2x4x512xf32, #tpu.memory_space<vmem>>, %arg3: memref<2x3x3xf32, #tpu.memory_space<vmem>>, %arg4: memref<2x3x512xf32, #tpu.memory_space<vmem>>, %arg5: memref<2x3x512xf32, #tpu.memory_space<vmem>>) attributes {dimension_semantics = [#tpu.dimension_semantics<parallel>, #tpu.dimension_semantics<parallel>], iteration_bounds = array<i64: 1, 1>, scalar_prefetch = 0 : i64, scratch_operands = 0 : i64, tpu.core_type = #tpu.core_type<tc>, window_params = [{transform_indices = @transform_0, window_bounds = array<i64: 2, 4, 512>}, {transform_indices = @transform_1, window_bounds = array<i64: 2, 3, 3>}, {transform_indices = @transform_2, window_bounds = array<i64: 2, 3, 512>}, {transform_indices = @transform_3, window_bounds = array<i64: 2, 3, 512>}]} {
    %c0 = arith.constant 0 : index
    %c0_0 = arith.constant 0 : index
    %c0_1 = arith.constant 0 : index
    %0 = vector.load %arg2[%c0, %c0_0, %c0_1] : memref<2x4x512xf32, #tpu.memory_space<vmem>>, vector<2x1x512xf32>
    %c0_2 = arith.constant 0 : index
    %c1 = arith.constant 1 : index
    %c0_3 = arith.constant 0 : index
    %1 = vector.load %arg2[%c0_2, %c1, %c0_3] : memref<2x4x512xf32, #tpu.memory_space<vmem>>, vector<2x1x512xf32>
    %c0_4 = arith.constant 0 : index
    %c2 = arith.constant 2 : index
    %c0_5 = arith.constant 0 : index
    %2 = vector.load %arg2[%c0_4, %c2, %c0_5] : memref<2x4x512xf32, #tpu.memory_space<vmem>>, vector<2x1x512xf32>
    %c0_6 = arith.constant 0 : index
    %c3 = arith.constant 3 : index
    %c0_7 = arith.constant 0 : index
    %3 = vector.load %arg2[%c0_6, %c3, %c0_7] : memref<2x4x512xf32, #tpu.memory_space<vmem>>, vector<2x1x512xf32>
    %c0_8 = arith.constant 0 : index
    %c0_9 = arith.constant 0 : index
    %c0_10 = arith.constant 0 : index
    %4 = vector.load %arg3[%c0_8, %c0_9, %c0_10] : memref<2x3x3xf32, #tpu.memory_space<vmem>>, vector<2x3x3xf32>
    %5 = vector.extract_strided_slice %4 {offsets = [0, 0, 0], sizes = [2, 3, 1], strides = [1, 1, 1]} : vector<2x3x3xf32> to vector<2x3x1xf32>
    %6 = vector.extract_strided_slice %4 {offsets = [0, 0, 1], sizes = [2, 3, 1], strides = [1, 1, 1]} : vector<2x3x3xf32> to vector<2x3x1xf32>
    %7 = vector.extract_strided_slice %4 {offsets = [0, 0, 2], sizes = [2, 3, 1], strides = [1, 1, 1]} : vector<2x3x3xf32> to vector<2x3x1xf32>
    %8 = vector.broadcast %5 : vector<2x3x1xf32> to vector<2x3x512xf32>
    %9 = vector.broadcast %0 : vector<2x1x512xf32> to vector<2x3x512xf32>
    %10 = arith.mulf %8, %9 : vector<2x3x512xf32>
    %11 = vector.broadcast %6 : vector<2x3x1xf32> to vector<2x3x512xf32>
    %12 = vector.broadcast %1 : vector<2x1x512xf32> to vector<2x3x512xf32>
    %13 = arith.mulf %11, %12 : vector<2x3x512xf32>
    %14 = arith.addf %10, %13 : vector<2x3x512xf32>
    %15 = vector.broadcast %7 : vector<2x3x1xf32> to vector<2x3x512xf32>
    %16 = arith.addf %14, %15 : vector<2x3x512xf32>
    %c0_11 = arith.constant 0 : index
    %c0_12 = arith.constant 0 : index
    %c0_13 = arith.constant 0 : index
    %17 = vector.load %arg4[%c0_11, %c0_12, %c0_13] : memref<2x3x512xf32, #tpu.memory_space<vmem>>, vector<2x3x512xf32>
    tpu.vector_store %arg4[%c0_11, %c0_12, %c0_13], %16 {strides = array<i32>} : memref<2x3x512xf32, #tpu.memory_space<vmem>>, vector<2x3x512xf32>,
    %18 = vector.broadcast %5 : vector<2x3x1xf32> to vector<2x3x512xf32>
    %19 = vector.broadcast %2 : vector<2x1x512xf32> to vector<2x3x512xf32>
    %20 = arith.mulf %18, %19 : vector<2x3x512xf32>
    %21 = vector.broadcast %6 : vector<2x3x1xf32> to vector<2x3x512xf32>
    %22 = vector.broadcast %3 : vector<2x1x512xf32> to vector<2x3x512xf32>
    %23 = arith.mulf %21, %22 : vector<2x3x512xf32>
    %24 = arith.addf %20, %23 : vector<2x3x512xf32>
    %25 = vector.broadcast %7 : vector<2x3x1xf32> to vector<2x3x512xf32>
    %26 = arith.addf %24, %25 : vector<2x3x512xf32>
    %c0_14 = arith.constant 0 : index
    %c0_15 = arith.constant 0 : index
    %c0_16 = arith.constant 0 : index
    %27 = vector.load %arg5[%c0_14, %c0_15, %c0_16] : memref<2x3x512xf32, #tpu.memory_space<vmem>>, vector<2x3x512xf32>
    tpu.vector_store %arg5[%c0_14, %c0_15, %c0_16], %26 {strides = array<i32>} : memref<2x3x512xf32, #tpu.memory_space<vmem>>, vector<2x3x512xf32>,
    return
  }
  func.func @transform_0(%arg0: i32, %arg1: i32) -> (i32, i32, i32) {
    %c0_i32 = arith.constant 0 : i32
    %c0_i32_0 = arith.constant 0 : i32
    return %arg0, %c0_i32, %arg1 : i32, i32, i32
  }
  func.func @transform_1(%arg0: i32, %arg1: i32) -> (i32, i32, i32) {
    %c0_i32 = arith.constant 0 : i32
    %c0_i32_0 = arith.constant 0 : i32
    %c0_i32_1 = arith.constant 0 : i32
    return %arg0, %c0_i32, %c0_i32_0 : i32, i32, i32
  }
  func.func @transform_2(%arg0: i32, %arg1: i32) -> (i32, i32, i32) {
    %c0_i32 = arith.constant 0 : i32
    %c0_i32_0 = arith.constant 0 : i32
    return %arg0, %c0_i32, %arg1 : i32, i32, i32
  }
  func.func @transform_3(%arg0: i32, %arg1: i32) -> (i32, i32, i32) {
    %c0_i32 = arith.constant 0 : i32
    %c0_i32_0 = arith.constant 0 : i32
    return %arg0, %c0_i32, %arg1 : i32, i32, i32
  }
}

</mosaic_0001>

<bundles_post_ra>
// kernel: normalize_and_expand_k.1
= control target key start
LH: loop header
LB: loop body
LE: loop exit
PB: predicated region body
PF: predicated region fallthrough
CT: control target
= control target key end

     0   :  { %9 = vsyncpa [#allocation3], 0  ;;  %s385_s12 = smov [#allocation2]   ;;  %s554_s0 = inlined_call_operand.hbm [shape: f32[2,4,512], index: 0, kind: input, shape index: {}]   ;;  %s555_s1 = inlined_call_operand.vmem [shape: f32[2,3,3], index: 1, kind: input, shape index: {}]   ;;  %s556_s2 = inlined_call_operand.vmem [shape: f32[2,3,512], index: 2, kind: output, shape index: {0}]   ;;  %s557_s3 = inlined_call_operand.vmem [shape: f32[2,3,512], index: 3, kind: output, shape index: {1}]  }
   0x1   :  { %s15_s13 = sshll.u32 %s385_s12, 4  ;;  %s361_s16 = scalar_lea.hbm %s554_s0, 512  ;;  %s16_s13 = int_to_ptr.vmem [resolvable:$true] %s15_s13 }
   0x2   :  { %p362_p0 = scmp.ne.s32.totalorder %s554_s0, %s361_s16  ;;  %p365_p1 = scmp.lt.u32.totalorder %s361_s16, %s554_s0 }
   0x4   :  { %p367_p2 = pnand %p365_p1, %p362_p0 }
   0x6   :  { %370 = shalt.err (!%p367_p2)
}
   0x7   :  { %s371_s21 = scalar_lea.vmem %s16_s13, 512  ;;  %p376_p4 = scmp.lt.s32.totalorder %s16_s13, %s16_s13 }
   0x8   :  { %p372_p3 = scmp.ne.s32.totalorder %s16_s13, %s371_s21  ;;  %p377_p5 = scmp.lt.s32.totalorder %s371_s21, %s371_s21 }
   0xa   :  { %p378_p6 = por %p377_p5, %p376_p4 }
   0xc   :  { %p379_p7 = pnand %p378_p6, %p372_p3 }
   0xe   :  { %382 = shalt.err (!%p379_p7)
}
   0xf   :  { %s386_s22 = smov 256   ;;  %s387_s23 = smov 16  }
  0x10   :  { %21 = dma.hbm_to_vmem [thread:$0]  %s554_s0, 512, %s16_s13, [#allocation3], %s386_s22, %s386_s22, %s387_s23  }
  0x11   :  { %383 = dma.done.wait [#allocation3], 512  }
  0x12   :  { %384 = vsyncadd [#allocation3], 4294966784  ;;  %v388_v0 = vmov 1   ;;  %v389_v1 = vmov 0   ;;  %v42_v2 = vld [vmem:[%s555_s1] sm:$0x7]  ;;  %v56_v5 = vlaneseq }
  0x13   :  { %358 = vset.pattern.permute.xlu1 %v388_v0  ;;  %357 = vset.pattern.permute.xlu0 %v389_v1  ;;  %v43_v3 = vld [vmem:[%s555_s1 + $0x4] sm:$0x7]  ;;  %v390_v4 = vmov 2   ;;  %v431_v8 = vld [vmem:[#allocation2 + $0x10] ss:$4 sm:$0xf] }
  0x14   :  { %105 = vperm.xlu1 %358, %v42_v2   ;;  %46 = vperm.xlu0 %357, %v42_v2   ;;  %v57_v6 = vshrl.u32 %v56_v5, 7  ;;  %v439_v12 = vld [vmem:[#allocation2 + $0x11] ss:$4 sm:$0xf] }
  0x15   :  { %v441_v13 = vld [vmem:[#allocation2 + $0x12] ss:$4 sm:$0xf]  ;;  %v443_v14 = vld [vmem:[#allocation2 + $0x13] ss:$4 sm:$0xf] }
  0x16   :  { %v429_v7 = vsub.s32 0, %v57_v6  ;;  %v433_v9 = vsub.s32 1, %v57_v6  ;;  %v435_v10 = vsub.s32 2, %v57_v6  ;;  %v437_v11 = vsub.s32 3, %v57_v6 }
  0x17   :  { %v27_v23 = vld [vmem:[#allocation2] ss:$4 sm:$0xf]  ;;  %v31_v28 = vld [vmem:[#allocation2 + $0x1] ss:$4 sm:$0xf] }
  0x18   :  { %109 = vperm.xlu1 %358, %v43_v3   ;;  %51 = vperm.xlu0 %357, %v43_v3   ;;  %v75_v15 = vrot.slane %v431_v8, %v429_v7  ;;  %v79_v16 = vrot.slane %v431_v8, %v433_v9  ;;  %v83_v17 = vrot.slane %v431_v8, %v435_v10  ;;  %v35_v33 = vld [vmem:[#allocation2 + $0x2] ss:$4 sm:$0xf]  ;;  %v477_v34 = vld [vmem:[#allocation2 + $0x3] ss:$4 sm:$0xf] }
  0x19   :  { %v87_v18 = vrot.slane %v431_v8, %v437_v11  ;;  %v133_v19 = vrot.slane %v439_v12, %v429_v7  ;;  %v137_v20 = vrot.slane %v439_v12, %v433_v9  ;;  %v141_v21 = vrot.slane %v439_v12, %v435_v10 }
  0x1a   :  { %v145_v22 = vrot.slane %v439_v12, %v437_v11  ;;  %v227_v24 = vrot.slane %v441_v13, %v429_v7  ;;  %v231_v25 = vrot.slane %v441_v13, %v433_v9  ;;  %v235_v26 = vrot.slane %v441_v13, %v435_v10 }
  0x1b   :  { %v239_v27 = vrot.slane %v441_v13, %v437_v11  ;;  %v277_v29 = vrot.slane %v443_v14, %v429_v7  ;;  %v281_v30 = vrot.slane %v443_v14, %v433_v9  ;;  %v285_v31 = vrot.slane %v443_v14, %v435_v10 }
  0x1c   :  { %360 = vset.pattern.permute.xlu1 %v390_v4  ;;  %359 = vset.pattern.permute.xlu0 %v390_v4  ;;  %v289_v32 = vrot.slane %v443_v14, %v437_v11  ;;  %v59_v35 = vrot.slane %v27_v23, %v429_v7  ;;  %v63_v36 = vrot.slane %v27_v23, %v433_v9 }
  0x1d   :  { %175 = vperm.xlu1 %360, %v43_v3   ;;  %171 = vperm.xlu0 %359, %v42_v2   ;;  %v67_v37 = vrot.slane %v27_v23, %v435_v10  ;;  %v71_v38 = vrot.slane %v27_v23, %v437_v11  ;;  %v117_v39 = vrot.slane %v31_v28, %v429_v7 }
  0x1e   :  { %v121_v40 = vrot.slane %v31_v28, %v433_v9  ;;  %v125_v41 = vrot.slane %v31_v28, %v435_v10  ;;  %v129_v42 = vrot.slane %v31_v28, %v437_v11  ;;  %v211_v43 = vrot.slane %v35_v33, %v429_v7 }
  0x1f   :  { %v215_v44 = vrot.slane %v35_v33, %v433_v9  ;;  %v219_v45 = vrot.slane %v35_v33, %v435_v10  ;;  %v223_v46 = vrot.slane %v35_v33, %v437_v11  ;;  %v261_v49 = vrot.slane %v477_v34, %v429_v7 }
  0x20   :  { %v265_v50 = vrot.slane %v477_v34, %v433_v9  ;;  %v269_v51 = vrot.slane %v477_v34, %v435_v10  ;;  %v273_v52 = vrot.slane %v477_v34, %v437_v11 }
  0x93   :  { %v491_v47 = vpop.permute.xlu1 %105  ;;  %v47_v48 = vpop.permute.xlu0 %46 }
  0x94   :  { %v96_v53 = vmul.f32 %v59_v35, %v47_v48  ;;  %v97_v54 = vmul.f32 %v63_v36, %v47_v48  ;;  %v98_v55 = vmul.f32 %v67_v37, %v47_v48  ;;  %v99_v56 = vmul.f32 %v71_v38, %v47_v48 }
  0x95   :  { %v154_v57 = vmul.f32 %v117_v39, %v491_v47  ;;  %v155_v58 = vmul.f32 %v121_v40, %v491_v47  ;;  %v156_v59 = vmul.f32 %v125_v41, %v491_v47  ;;  %v157_v60 = vmul.f32 %v129_v42, %v491_v47 }
  0x96   :  { %v248_v61 = vmul.f32 %v211_v43, %v47_v48  ;;  %v505_v62 = vmul.f32 %v215_v44, %v47_v48  ;;  %v507_v63 = vmul.f32 %v219_v45, %v47_v48  ;;  %v509_v0 = vmul.f32 %v223_v46, %v47_v48 }
  0x97   :  { %v110_v1 = vpop.permute.xlu1 %109  ;;  %v52_v2 = vpop.permute.xlu0 %51  ;;  %v162_v3 = vadd.f32 %v154_v57, %v96_v53  ;;  %v163_v4 = vadd.f32 %v155_v58, %v97_v54  ;;  %v164_v5 = vadd.f32 %v156_v59, %v98_v55  ;;  %v165_v6 = vadd.f32 %v157_v60, %v99_v56 }
  0x98   :  { %v100_v8 = vmul.f32 %v75_v15, %v52_v2  ;;  %v101_v12 = vmul.f32 %v79_v16, %v52_v2  ;;  %v102_v13 = vmul.f32 %v83_v17, %v52_v2  ;;  %v103_v14 = vmul.f32 %v87_v18, %v52_v2 }
  0x99   :  { %v158_v23 = vmul.f32 %v133_v19, %v110_v1  ;;  %v159_v28 = vmul.f32 %v137_v20, %v110_v1  ;;  %v160_v33 = vmul.f32 %v141_v21, %v110_v1  ;;  %v161_v35 = vmul.f32 %v145_v22, %v110_v1 }
  0x9a   :  { %v252_v36 = vmul.f32 %v227_v24, %v52_v2  ;;  %v253_v37 = vmul.f32 %v231_v25, %v52_v2  ;;  %v254_v38 = vmul.f32 %v235_v26, %v52_v2  ;;  %v255_v39 = vmul.f32 %v239_v27, %v52_v2 }
  0x9b   :  { %v166_v40 = vadd.f32 %v158_v23, %v100_v8  ;;  %v167_v41 = vadd.f32 %v159_v28, %v101_v12  ;;  %v168_v42 = vadd.f32 %v160_v33, %v102_v13  ;;  %v169_v43 = vadd.f32 %v161_v35, %v103_v14 }
  0x9c   :  { %v176_v44 = vpop.permute.xlu1 %175  ;;  %v302_v45 = vmul.f32 %v277_v29, %v110_v1  ;;  %v303_v46 = vmul.f32 %v281_v30, %v110_v1  ;;  %v304_v48 = vmul.f32 %v285_v31, %v110_v1  ;;  %v305_v15 = vmul.f32 %v289_v32, %v110_v1  ;;  %v172_v16 = vpop.permute.xlu0 %171 }
  0x9d   :  { %v182_v17 = vadd.f32 %v176_v44, %v166_v40  ;;  %v183_v18 = vadd.f32 %v176_v44, %v167_v41  ;;  %v184_v19 = vadd.f32 %v176_v44, %v168_v42  ;;  %v185_v20 = vadd.f32 %v176_v44, %v169_v43 }
  0x9e   :  { %v310_v21 = vadd.f32 %v302_v45, %v252_v36  ;;  %v311_v22 = vadd.f32 %v303_v46, %v253_v37  ;;  %v312_v24 = vadd.f32 %v304_v48, %v254_v38  ;;  %v313_v25 = vadd.f32 %v305_v15, %v255_v39 }
  0x9f   :  { %v196_v26 = vcombine.low %v182_v17, %v183_v18  ;;  %v197_v27 = vcombine.low %v184_v19, %v185_v20  ;;  %v178_v53 = vadd.f32 %v172_v16, %v162_v3  ;;  %v179_v54 = vadd.f32 %v172_v16, %v163_v4 }
  0xa0   :  { %v318_v55 = vadd.f32 %v310_v21, %v176_v44  ;;  %v319_v56 = vadd.f32 %v311_v22, %v176_v44  ;;  %v320_v57 = vadd.f32 %v312_v24, %v176_v44  ;;  %v321_v29 = vadd.f32 %v313_v25, %v176_v44 }
  0xa1   :  { %204 = vst [vmem:[%s556_s2 + $0x10] sm:$0x77] %v196_v26  ;;  %205 = vst [vmem:[%s556_s2 + $0x18] sm:$0x77] %v197_v27  ;;  %v180_v30 = vadd.f32 %v172_v16, %v164_v5  ;;  %v181_v31 = vadd.f32 %v172_v16, %v165_v6  ;;  %v194_v32 = vcombine.low %v178_v53, %v179_v54 }
  0xa2   :  { %v298_v58 = vmul.f32 %v261_v49, %v491_v47  ;;  %v332_v59 = vcombine.low %v318_v55, %v319_v56  ;;  %v333_v60 = vcombine.low %v320_v57, %v321_v29  ;;  %v299_v1 = vmul.f32 %v265_v50, %v491_v47 }
  0xa3   :  { %v300_v2 = vmul.f32 %v269_v51, %v491_v47  ;;  %v195_v3 = vcombine.low %v180_v30, %v181_v31  ;;  %202 = vst [vmem:[%s556_s2] sm:$0x77] %v194_v32  ;;  %v301_v7 = vmul.f32 %v273_v52, %v491_v47 }
  0xa4   :  { %v306_v49 = vadd.f32 %v298_v58, %v248_v61  ;;  %340 = vst [vmem:[%s557_s3 + $0x10] sm:$0x77] %v332_v59  ;;  %341 = vst [vmem:[%s557_s3 + $0x18] sm:$0x77] %v333_v60  ;;  %v307_v9 = vadd.f32 %v299_v1, %v505_v62 }
  0xa5   :  { %v308_v10 = vadd.f32 %v300_v2, %v507_v63  ;;  %203 = vst [vmem:[%s556_s2 + $0x8] sm:$0x77] %v195_v3  ;;  %v309_v11 = vadd.f32 %v301_v7, %v509_v0 }
  0xa6   :  { %v314_v34 = vadd.f32 %v306_v49, %v172_v16  ;;  %v315_v47 = vadd.f32 %v307_v9, %v172_v16 }
  0xa7   :  { %v316_v50 = vadd.f32 %v308_v10, %v172_v16  ;;  %v317_v51 = vadd.f32 %v309_v11, %v172_v16 }
  0xa8   :  { %v330_v52 = vcombine.low %v314_v34, %v315_v47 }
  0xa9   :  { %v331_v61 = vcombine.low %v316_v50, %v317_v51 }
  0xaa   :  { %338 = vst [vmem:[%s557_s3] sm:$0x77] %v330_v52 }
  0xab   :  { %339 = vst [vmem:[%s557_s3 + $0x8] sm:$0x77] %v331_v61 }
  0xac   :  { %350 = vsyncpa [#allocation3], 1 }

</bundles_post_ra>
